<compile_context>
chip_gen: v6e
topology: v6e:2x2x1
jax: 0.10.0
libtpu: 0.0.40
codegen_flags: <defaults>
</compile_context>

<pallas_src>
import functools

import jax
import jax.numpy as jnp
from jax.experimental import pallas as pl
from jax.experimental.pallas import tpu as pltpu


@functools.lru_cache(maxsize=None)
def _roll_matches_jnp_roll() -> bool:
    """One-time probe of the pltpu.roll direction convention.

    Returns True iff pltpu.roll(x, s, axis)[..., i] == x[..., (i - s) % n]
    (i.e. identical to jnp.roll).  The probe is wrapped in
    jax.ensure_compile_time_eval() so it stays concrete (and is evaluated
    once, eagerly) even if the wrapper is being traced under jax.jit.
    """
    def k(x_ref, o_ref):
        o_ref[...] = pltpu.roll(x_ref[...], 1, axis=1)

    with jax.ensure_compile_time_eval():
        x = jnp.tile(jnp.arange(128, dtype=jnp.float32)[None, :], (8, 1))
        y = pl.pallas_call(
            k, out_shape=jax.ShapeDtypeStruct((8, 128), jnp.float32))(x)
        # jnp.roll convention: y[0, 1] == x[0, 0] == 0.
        return bool(y[0, 1] == 0.0)


def _conv_bn_relu6_kernel(x_ref, w_ref, m_ref, b_ref, o_ref, *,
                          W, KH, KW, roll_matches_jnp):
    """One group of images per grid step, spatial axis flattened onto lanes.

    x_ref: (cin_p, L)           L = images_per_step * HW_padded, lane-dense
    w_ref: (cout, KH*KW*cin_p)  fused per-tap filters, BN scale pre-folded
    m_ref: (KH*KW, L)           per-tap source-validity mask ('same' zero pad)
    b_ref: (cout, 1)            folded BN bias (beta - mean * scale), f32
    o_ref: (cout, L)
    """
    x = x_ref[...]                                   # (cin_p, L)
    L = x.shape[1]

    pieces = []
    for kh in range(KH):
        dh = kh - KH // 2
        for kw in range(KW):
            dw = kw - KW // 2
            d = dh * W + dw                          # flat source offset
            if d == 0:
                # Centre tap: source pixel is always in-image -> no roll, no
                # mask multiply (review item 2).
                pieces.append(x)
            else:
                shift = ((-d) if roll_matches_jnp else d) % L
                # XLU lane rotation instead of relayout slice+reshape copies.
                patch = pltpu.roll(x, shift, axis=1)
                # Zero positions whose source pixel is outside the image (and
                # any roll wrap-around, incl. across images within the group).
                t = kh * KW + kw
                pieces.append(patch * m_ref[t:t + 1, :])

    # Tile-aligned sublane stack -> (KH*KW*cin_p, L) slab, then a single MXU
    # contraction: accumulation happens inside the MXU, not as a VPU add chain.
    slab = jnp.concatenate(pieces, axis=0)
    acc = jnp.dot(w_ref[...], slab, preferred_element_type=jnp.float32)

    y = acc + b_ref[...]                             # folded BN bias
    o_ref[...] = jnp.clip(y, 0.0, 6.0).astype(o_ref.dtype)   # ReLU6


def _images_per_step(n, hw_padded, target_lanes=2048):
    """Images folded onto the lane axis per grid step.

    Prefer larger lane-dense blocks (amortize per-step overhead / tiny DMAs)
    but keep >=2 parallel grid steps when the batch allows it, so both of
    v7x's TensorCores are used (irrelevant on v5e/v6e: 1 TC).
    """
    gb = max(1, min(n, target_lanes // max(hw_padded, 1)))
    while gb > 1 and n // gb < 2:
        gb //= 2
    while n % gb != 0:            # groups must tile the batch exactly
        gb -= 1
    return gb


def dynamic_conv2d_norm_activation(x_nchw, weight_oihw, gamma, beta,
                                   running_mean, running_var,
                                   *, active_out_channel, kernel_size=3,
                                   stride=1, dilation=1, eps=1e-5,
                                   compute_dtype=jnp.float32):
    """Forward pass of DynamicConv2dNormActivation (use_bn=True, act='relu6')."""
    assert stride == 1 and dilation == 1, "only module defaults implemented"
    assert kernel_size % 2 == 1, "kernel size should be odd (get_same_padding)"
    # TODO(synk): training-mode BatchNorm (batch statistics) not implemented;
    # eval-mode running-stat semantics are used (DynamicBatchNorm2d inference).

    N, cin, H, W = x_nchw.shape
    cout = active_out_channel
    KH = KW = kernel_size
    HW = H * W
    # Lane-dense blocks: pad each image's flattened spatial axis to a multiple
    # of 128 so output stores are unmasked vst (review item on (8,128) rule).
    HWp = ((HW + 127) // 128) * 128
    # Pad cin up to a full sublane tile so the in-kernel tap stack (sublane
    # concat) is tile-aligned; padded channels are zero in x and in w.
    sublane = 8 * (4 // jnp.dtype(compute_dtype).itemsize)
    cin_p = ((cin + sublane - 1) // sublane) * sublane
    gb = _images_per_step(N, HWp)
    G = N // gb
    L = gb * HWp

    # --- glue (layout plumbing only; free reshapes in the common case) -----
    x_flat = x_nchw.reshape(N, cin, HW).astype(compute_dtype)
    if HWp != HW:
        x_flat = jnp.pad(x_flat, ((0, 0), (0, 0), (0, HWp - HW)))
    if cin_p != cin:
        x_flat = jnp.pad(x_flat, ((0, 0), (0, cin_p - cin), (0, 0)))
    if gb > 1:
        # Fold gb images onto the lane axis of each grid step.
        x_flat = (x_flat.reshape(G, gb, cin_p, HWp)
                  .transpose(0, 2, 1, 3).reshape(G, cin_p, L))
    else:
        x_flat = x_flat.reshape(G, cin_p, L)

    # BN folding: scale into the conv weights, bias kept separately (f32).
    inv_std = 1.0 / jnp.sqrt(running_var[:cout].astype(jnp.float32) + eps)
    scale = gamma[:cout].astype(jnp.float32) * inv_std                # (cout,)
    bias = (beta[:cout].astype(jnp.float32)
            - running_mean[:cout].astype(jnp.float32) * scale).reshape(cout, 1)

    # DynamicPointConv2d channel slicing: weight[:cout, :cin, :, :]; fold BN
    # scale and pre-shape for the fused (cout, 9*cin_p) @ (9*cin_p, L) dot.
    w = weight_oihw[:cout, :cin, :, :].astype(jnp.float32)
    w = w * scale[:, None, None, None]
    if cin_p != cin:
        w = jnp.pad(w, ((0, 0), (0, cin_p - cin), (0, 0), (0, 0)))
    w_fused = (jnp.transpose(w, (0, 2, 3, 1))             # (cout, KH, KW, cin_p)
               .reshape(cout, KH * KW * cin_p).astype(compute_dtype))

    # Per-tap validity mask over flattened (padded) output positions; zero
    # where the tap's source pixel falls outside the image -> 'same' zero
    # padding without a padded input copy in HBM.
    # TODO(synk): at realistic H*W, decompose into row/col masks or generate
    # in-kernel from broadcasted_iota to shrink the resident (9, L) stream.
    hh = jnp.arange(H)[:, None]
    ww = jnp.arange(W)[None, :]
    masks = []
    for kh in range(KH):
        dh = kh - KH // 2
        for kw in range(KW):
            dw = kw - KW // 2
            valid = ((hh + dh >= 0) & (hh + dh < H) &
                     (ww + dw >= 0) & (ww + dw < W)).reshape(HW)
            if HWp != HW:
                valid = jnp.pad(valid, (0, HWp - HW))
            masks.append(valid)
    tap_mask = jnp.stack(masks).astype(compute_dtype)      # (KH*KW, HWp)
    if gb > 1:
        tap_mask = jnp.tile(tap_mask, (1, gb))             # (KH*KW, L)

    kernel = functools.partial(
        _conv_bn_relu6_kernel, W=W, KH=KH, KW=KW,
        roll_matches_jnp=_roll_matches_jnp_roll())

    # TODO(synk): for realistic image sizes add a halo'd H-tile grid axis and
    # re-derive the tile pixels T from v7x's 64 MiB VMEM budget
    # (~(2*cin_p + 2*cout + 9) * T * 4B per step, double-buffered inputs);
    # unnecessary at these shapes.
    out = pl.pallas_call(
        kernel,
        out_shape=jax.ShapeDtypeStruct((G, cout, L), x_nchw.dtype),
        grid_spec=pltpu.PrefetchScalarGridSpec(
            num_scalar_prefetch=0,
            grid=(G,),
            in_specs=[
                pl.BlockSpec((pl.Squeezed(), cin_p, L), lambda g: (g, 0, 0)),
                pl.BlockSpec((cout, KH * KW * cin_p), lambda g: (0, 0)),
                pl.BlockSpec((KH * KW, L), lambda g: (0, 0)),
                pl.BlockSpec((cout, 1), lambda g: (0, 0)),
            ],
            out_specs=pl.BlockSpec((pl.Squeezed(), cout, L),
                                   lambda g: (g, 0, 0)),
        ),
        compiler_params=pltpu.CompilerParams(
            dimension_semantics=("parallel",)),
    )(x_flat, w_fused, tap_mask, bias)

    # Undo the batch folding / spatial padding (free when gb == 1, HWp == HW).
    if gb > 1:
        out = (out.reshape(G, cout, gb, HWp)
               .transpose(0, 2, 1, 3).reshape(N, cout, HWp))
    else:
        out = out.reshape(N, cout, HWp)
    return out[:, :, :HW].reshape(N, cout, H, W)


def _reference(x_nchw, weight_oihw, gamma, beta, running_mean, running_var,
               *, active_out_channel, kernel_size=3, eps=1e-5):
    out_ch = active_out_channel
    in_ch = x_nchw.shape[1]
    pad = (kernel_size - 1) // 2
    w = weight_oihw[:out_ch, :in_ch, :, :]
    y = jax.lax.conv_general_dilated(
        x_nchw, w, window_strides=(1, 1),
        padding=((pad, pad), (pad, pad)),
        dimension_numbers=("NCHW", "OIHW", "NCHW"))
    mean = running_mean[:out_ch].reshape(1, -1, 1, 1)
    var = running_var[:out_ch].reshape(1, -1, 1, 1)
    g = gamma[:out_ch].reshape(1, -1, 1, 1)
    b = beta[:out_ch].reshape(1, -1, 1, 1)
    y = (y - mean) / jnp.sqrt(var + eps) * g + b
    return jnp.clip(y, 0.0, 6.0)


if __name__ == "__main__":
    # Module config: in_channel_list=[2, 4], out_channel_list=[4, 8],
    # kernel_size=3, stride=1, use_bn=True, activation='relu6'.
    in_channel_list = [2, 4]
    out_channel_list = [4, 8]
    max_in, max_out = max(in_channel_list), max(out_channel_list)
    kernel_size = 3
    N, H, W = 2, 16, 16
    in_ch = max_in                      # x.size(1)
    active_out_channel = max_out        # default: max(out_channel_list)

    key = jax.random.PRNGKey(0)
    k_x, k_w, k_g, k_b, k_m, k_v, k_x2 = jax.random.split(key, 7)

    x = jax.random.normal(k_x, (N, in_ch, H, W), jnp.float32)
    # conv weight: (max_out, max_in, k, k), no bias
    weight = jax.random.normal(k_w, (max_out, max_in, kernel_size, kernel_size),
                               jnp.float32) * 0.1
    # BatchNorm2d(max_out) parameters / running statistics (deterministic)
    gamma = 1.0 + 0.1 * jax.random.normal(k_g, (max_out,), jnp.float32)
    beta = 0.1 * jax.random.normal(k_b, (max_out,), jnp.float32)
    running_mean = 0.1 * jax.random.normal(k_m, (max_out,), jnp.float32)
    running_var = jax.random.uniform(k_v, (max_out,), jnp.float32, 0.5, 1.5)

    out = dynamic_conv2d_norm_activation(
        x, weight, gamma, beta, running_mean, running_var,
        active_out_channel=active_out_channel, kernel_size=kernel_size)
    out = jax.block_until_ready(out)

    ref = _reference(x, weight, gamma, beta, running_mean, running_var,
                     active_out_channel=active_out_channel,
                     kernel_size=kernel_size)
    assert out.shape == (N, active_out_channel, H, W), out.shape
    err = float(jnp.max(jnp.abs(out - ref)))
    assert jnp.allclose(out, ref, atol=1e-4, rtol=1e-4), err

    # Additional correctness check exercising the batch-folded path
    # (>1 image folded onto the lane axis per grid step).
    x4 = jax.random.normal(k_x2, (4, in_ch, H, W), jnp.float32)
    out4 = jax.block_until_ready(dynamic_conv2d_norm_activation(
        x4, weight, gamma, beta, running_mean, running_var,
        active_out_channel=active_out_channel, kernel_size=kernel_size))
    ref4 = _reference(x4, weight, gamma, beta, running_mean, running_var,
                      active_out_channel=active_out_channel,
                      kernel_size=kernel_size)
    err4 = float(jnp.max(jnp.abs(out4 - ref4)))
    assert jnp.allclose(out4, ref4, atol=1e-4, rtol=1e-4), err4

    print("KERNEL_OK")
</pallas_src>

<mosaic_0001>
module attributes {stable_mosaic.version = 11 : i64} {
  func.func @k(%arg0: memref<8x128xf32, #tpu.memory_space<vmem>>, %arg1: memref<8x128xf32, #tpu.memory_space<vmem>>) attributes {dimension_semantics = [], scalar_prefetch = 0 : i64, scratch_operands = 0 : i64, tpu.core_type = #tpu.core_type<tc>} {
    %c0 = arith.constant 0 : index
    %c0_0 = arith.constant 0 : index
    %0 = vector.load %arg0[%c0, %c0_0] : memref<8x128xf32, #tpu.memory_space<vmem>>, vector<8x128xf32>
    %c1_i32 = arith.constant 1 : i32
    %1 = tpu.dynamic_rotate %0 by %c1_i32 dim 1 : vector<8x128xf32>, i32 -> vector<8x128xf32>
    %c0_1 = arith.constant 0 : index
    %c0_2 = arith.constant 0 : index
    %2 = vector.load %arg1[%c0_1, %c0_2] : memref<8x128xf32, #tpu.memory_space<vmem>>, vector<8x128xf32>
    tpu.vector_store %arg1[%c0_1, %c0_2], %1 {strides = array<i32>} : memref<8x128xf32, #tpu.memory_space<vmem>>, vector<8x128xf32>,
    return
  }
}

</mosaic_0001>

<bundles_post_ra>
// kernel: tpu_custom_call.1
= control target key start
LH: loop header
LB: loop body
LE: loop exit
PB: predicated region body
PF: predicated region fallthrough
CT: control target
= control target key end

     0   :  { %6 = vsyncpa [#allocation3], 0  ;;  %s106_s0 = inlined_call_operand.hbm [shape: f32[8,128], index: 0, kind: input, shape index: {}]   ;;  %s107_s1 = inlined_call_operand.hbm [shape: f32[8,128], index: 1, kind: output, shape index: {}]  }
   0x1   :  { %7 = vsyncpa [#allocation4], 0  ;;  %s87_s6 = smov [#allocation2]  }
   0x2   :  { %s14_s7 = sshll.u32 %s87_s6, 4  ;;  %s15_s7 = int_to_ptr.vmem [resolvable:$true] %s14_s7 }
   0x3   :  { %s51_s8 = scalar_lea.vmem %s15_s7, 128  ;;  %p56_p1 = scmp.lt.s32.totalorder %s15_s7, %s15_s7 }
   0x4   :  { %p52_p0 = scmp.ne.s32.totalorder %s15_s7, %s51_s8  ;;  %p57_p2 = scmp.lt.s32.totalorder %s51_s8, %s51_s8 }
   0x6   :  { %p58_p3 = por %p57_p2, %p56_p1 }
   0x8   :  { %p59_p4 = pnand %p58_p3, %p52_p0 }
   0xa   :  { %62 = shalt.err (!%p59_p4)
}
   0xb   :  { %17 = dma.hbm_to_vmem [thread:$0]  %s106_s0, 128, %s15_s7, [#allocation3]  }
   0xc   :  { %83 = dma.done.wait [#allocation3], 128  }
   0xd   :  { %84 = vsyncadd [#allocation3], 4294967168  ;;  %v21_v0 = vld [vmem:[#allocation2] sm:$0xff]  ;;  %s88_s11 = smov 1   ;;  %s89_s12 = smov [#allocation5]  }
   0xe   :  { %22 = vrot.lane.b32.xlu0 %v21_v0, %s88_s11  ;;  %s31_s13 = sshll.u32 %s89_s12, 4  ;;  %s32_s13 = int_to_ptr.vmem [resolvable:$true] %s31_s13 }
   0xf   :  { %s63_s14 = scalar_lea.vmem %s32_s13, 128  ;;  %p68_p6 = scmp.lt.s32.totalorder %s32_s13, %s32_s13 }
  0x10   :  { %p64_p5 = scmp.ne.s32.totalorder %s32_s13, %s63_s14  ;;  %p69_p7 = scmp.lt.s32.totalorder %s63_s14, %s63_s14 }
  0x12   :  { %p70_p8 = por %p69_p7, %p68_p6 }
  0x14   :  { %p71_p9 = pnand %p70_p8, %p64_p5 }
  0x80   :  { %v23_v1 = vpop.permute.xlu0 %22 }
  0x81   :  { %24 = vst [vmem:[#allocation5] sm:$0xff] %v23_v1 }
  0x82   :  { %74 = shalt.err (!%p71_p9)
}
  0x83   :  { %34 = dma.vmem_to_hbm [thread:$0]  %s32_s13, 128, %s107_s1, [#allocation4]  }
  0x84   :  { %85 = dma.done.wait [#allocation4], 128  }
  0x85   :  { %86 = vsyncadd [#allocation4], 4294967168 }
  0x86   :  { %38 = vsyncpa [#allocation3], 1 }
  0x87   :  { %39 = vsyncpa [#allocation4], 1 }

</bundles_post_ra>
